<compile_context>
chip_gen: v6e
topology: v6e:2x2x1
jax: 0.10.0
libtpu: 0.0.40
codegen_flags: <defaults>
</compile_context>

<pallas_src>
import functools

import jax
import jax.numpy as jnp
from jax.experimental import pallas as pl
from jax.experimental.pallas import tpu as pltpu


def _round_up(x, m):
    return ((x + m - 1) // m) * m


def _tpu_generation():
    """Best-effort TPU generation (5, 6, 7, ...) from the device kind string."""
    try:
        kind = jax.devices()[0].device_kind.lower()
    except Exception:
        return 6
    for g in (7, 6, 5, 4):
        if f"v{g}" in kind or f"tpu{g}" in kind:
            return g
    return 6


def _mxu_dim():
    # v6e / v7x MXU is 256x256, v5e (and older) is 128x128.
    return 256 if _tpu_generation() >= 6 else 128


def _vmem_capacity_bytes():
    try:
        return int(pltpu.get_tpu_info().vmem_capacity_bytes)
    except Exception:
        return (64 << 20) if _tpu_generation() >= 7 else (128 << 20)


# ----------------------------------------------------------------------------
# Kernel.  Weights / activations in compute dtype (bf16 or f32), biases in f32,
# all matmuls accumulate in f32 on the MXU, bias-add / ReLU in f32 on the VPU.
# ----------------------------------------------------------------------------
def _mh_mixture_kernel(x_ref, w_in_ref, b_in_ref, w_ff1_ref, b_ff1_ref,
                       w_ff2_ref, b_ff2_ref, w_out_ref, b_out_ref,
                       o_ref, *scratch, n_groups, g):
    cdt = w_in_ref.dtype
    tm = x_ref.shape[0]

    x = x_ref[...].astype(cdt)                    # per-tile cast (no extra HBM pass)

    # mh_input_layer + ReLU
    h = jnp.dot(x, w_in_ref[...], preferred_element_type=jnp.float32)
    h = jnp.maximum(h + b_in_ref[...], 0.0).astype(cdt)

    w1 = w_ff1_ref[...]
    w2 = w_ff2_ref[...]
    # Hoisted bias broadcasts (JAX does not CSE broadcast_in_dim inside the loop).
    b1 = jnp.broadcast_to(b_ff1_ref[...], (tm, g))
    b2 = jnp.broadcast_to(b_ff2_ref[...], (tm, g))

    if n_groups == 1:
        # FF weights already span the whole hidden dim (packed / block-diag).
        f = jnp.dot(h, w1, preferred_element_type=jnp.float32)
        f = jnp.maximum(f + b1, 0.0).astype(cdt)
        f = jnp.dot(f, w2, preferred_element_type=jnp.float32)
        f = (f + b2).astype(cdt)
    else:
        ff_scratch, = scratch                      # (tm, H) compute-dtype VMEM scratch
        for i in range(n_groups):
            hi = h[:, i * g:(i + 1) * g]           # lane-aligned slice (g % 128 == 0)
            fi = jnp.dot(hi, w1, preferred_element_type=jnp.float32)
            fi = jnp.maximum(fi + b1, 0.0).astype(cdt)
            fi = jnp.dot(fi, w2, preferred_element_type=jnp.float32)
            ff_scratch[:, i * g:(i + 1) * g] = (fi + b2).astype(cdt)
        f = ff_scratch[...]

    # mh_output_layer + ReLU
    y = jnp.dot(f, w_out_ref[...], preferred_element_type=jnp.float32)
    y = jnp.maximum(y + b_out_ref[...], 0.0)
    o_ref[...] = y.astype(o_ref.dtype)


# ----------------------------------------------------------------------------
# One-time weight prep (transpose, head packing, dtype cast) outside hot path.
# ----------------------------------------------------------------------------
def prepare_weights(params, *, num_heads=4, compute_dtype=jnp.bfloat16, pack=None):
    H = params["w_in"].shape[0]
    hd = H // num_heads

    if pack is None:
        if hd % 128 == 0:
            # Pack heads until one FF matmul fills the MXU width.
            mxu = _mxu_dim()
            pack = 1
            while (pack * 2 <= num_heads and num_heads % (pack * 2) == 0
                   and pack * hd < mxu):
                pack *= 2
        else:
            # Tiny / unaligned hd: fall back to a full (H, H) block-diagonal FF.
            pack = num_heads
    g = pack * hd
    n_groups = num_heads // pack

    w_in = params["w_in"].T.astype(compute_dtype)      # torch Linear stores (out, in)
    b_in = params["b_in"][None, :].astype(jnp.float32)
    w_out = params["w_out"].T.astype(compute_dtype)
    b_out = params["b_out"][None, :].astype(jnp.float32)

    def pack_w(w):                                      # (hd, hd) -> (g, g) block-diag
        wt = w.T.astype(compute_dtype)
        if pack == 1:
            return wt
        out = jnp.zeros((g, g), compute_dtype)
        for i in range(pack):
            out = out.at[i * hd:(i + 1) * hd, i * hd:(i + 1) * hd].set(wt)
        return out

    def pack_b(b):
        b = jnp.tile(b, pack) if pack > 1 else b
        return b[None, :].astype(jnp.float32)

    return dict(H=H, hd=hd, num_heads=num_heads, pack=pack, g=g, n_groups=n_groups,
                compute_dtype=compute_dtype,
                w_in=w_in, b_in=b_in,
                w_ff1=pack_w(params["w_ff1"]), b_ff1=pack_b(params["b_ff1"]),
                w_ff2=pack_w(params["w_ff2"]), b_ff2=pack_b(params["b_ff2"]),
                w_out=w_out, b_out=b_out)


# ----------------------------------------------------------------------------
# Forward.
# ----------------------------------------------------------------------------
def mh_mixture_forward(x, prepared, *, tile_rows=None):
    """x: (B, S, H); prepared: output of prepare_weights()."""
    B, S, H = x.shape
    assert H == prepared["H"]
    g = prepared["g"]
    n_groups = prepared["n_groups"]
    cdt = prepared["compute_dtype"]
    out_dtype = x.dtype
    gen = _tpu_generation()

    if tile_rows is None:
        tile_rows = 256 if gen >= 7 else 512        # 64 MiB VMEM on v7x, 128 MiB v5e/v6e

    M = B * S
    tm = _round_up(min(tile_rows, _round_up(M, 8)), 8)
    M_pad = _round_up(M, tm)
    grid = (M_pad // tm,)

    xf = x.reshape(M, H)                            # dtype cast happens inside kernel
    if M_pad != M:
        xf = jnp.pad(xf, ((0, M_pad - M), (0, 0)))  # zero pad: no garbage compute

    args = (xf, prepared["w_in"], prepared["b_in"],
            prepared["w_ff1"], prepared["b_ff1"],
            prepared["w_ff2"], prepared["b_ff2"],
            prepared["w_out"], prepared["b_out"])

    kernel = functools.partial(_mh_mixture_kernel, n_groups=n_groups, g=g)
    scratch_shapes = [] if n_groups == 1 else [pltpu.VMEM((tm, H), cdt)]

    # VMEM accounting: row tiles double-buffered, weights single-buffered, plus f32
    # intermediates headroom; clamp to ~85% of this generation's physical VMEM.
    weight_bytes = sum(int(a.size) * a.dtype.itemsize for a in args[1:])
    out_itemsize = jnp.dtype(out_dtype).itemsize
    need = (2 * tm * H * xf.dtype.itemsize          # input row tiles (x2 buffers)
            + 2 * tm * H * out_itemsize             # output row tiles (x2 buffers)
            + tm * H * jnp.dtype(cdt).itemsize      # FF scratch
            + weight_bytes                          # resident weights (single-buffered)
            + 4 * tm * H * 4)                       # f32 matmul intermediates headroom
    vmem_limit = int(min(max(need + (8 << 20), 32 << 20),
                         0.85 * _vmem_capacity_bytes()))

    ff_flops = 4 * M_pad * H * g                    # two (g,g) FF layers over all groups
    flops = 4 * M_pad * H * H + ff_flops            # + input/output (H,H) matmuls
    bytes_accessed = (int(xf.size) * xf.dtype.itemsize
                      + M_pad * H * out_itemsize + weight_bytes)

    def _run(single_buffer_weights):
        def const_spec(shape):
            # Constant-index blocks: never re-fetched, so single-buffer them to halve
            # their VMEM footprint (the key lever for v7x's 64 MiB per-core VMEM).
            if single_buffer_weights:
                return pl.BlockSpec(shape, lambda i: (0, 0),
                                    pipeline_mode=pl.Buffered(1))
            return pl.BlockSpec(shape, lambda i: (0, 0))

        row_spec = pl.BlockSpec((tm, H), lambda i: (i, 0))
        in_specs = [row_spec,
                    const_spec((H, H)), const_spec((1, H)),
                    const_spec((g, g)), const_spec((1, g)),
                    const_spec((g, g)), const_spec((1, g)),
                    const_spec((H, H)), const_spec((1, H))]

        return pl.pallas_call(
            kernel,
            out_shape=jax.ShapeDtypeStruct((M_pad, H), out_dtype),
            grid_spec=pltpu.PrefetchScalarGridSpec(
                num_scalar_prefetch=0,
                grid=grid,
                in_specs=in_specs,
                out_specs=pl.BlockSpec((tm, H), lambda i: (i, 0)),
                scratch_shapes=scratch_shapes,
            ),
            compiler_params=pltpu.CompilerParams(
                dimension_semantics=("parallel",),
                vmem_limit_bytes=vmem_limit,
            ),
            cost_estimate=pl.CostEstimate(
                flops=int(flops), transcendentals=0,
                bytes_accessed=int(bytes_accessed)),
        )(*args)

    try:
        out = _run(True)                 # single-buffered constant weight blocks
    except Exception:                    # graceful fallback if Buffered(1) unsupported
        out = _run(False)

    if M_pad != M:
        out = out[:M]
    return out.reshape(B, S, H)


# ----------------------------------------------------------------------------
# Deterministic parameter init (PyTorch-Linear-style uniform, shapes from __init__)
# ----------------------------------------------------------------------------
def init_params(key, hidden_size, num_heads=4):
    hd = hidden_size // num_heads
    ks = jax.random.split(key, 8)

    def lin(kw, kb, fan_in, out_f, in_f):
        bound = 1.0 / jnp.sqrt(fan_in)
        w = jax.random.uniform(kw, (out_f, in_f), jnp.float32, -bound, bound)
        b = jax.random.uniform(kb, (out_f,), jnp.float32, -bound, bound)
        return w, b

    w_in, b_in = lin(ks[0], ks[1], hidden_size, hidden_size, hidden_size)
    w_out, b_out = lin(ks[2], ks[3], hidden_size, hidden_size, hidden_size)
    w_ff1, b_ff1 = lin(ks[4], ks[5], hd, hd, hd)
    w_ff2, b_ff2 = lin(ks[6], ks[7], hd, hd, hd)
    return dict(w_in=w_in, b_in=b_in, w_out=w_out, b_out=b_out,
                w_ff1=w_ff1, b_ff1=b_ff1, w_ff2=w_ff2, b_ff2=b_ff2)


# ----------------------------------------------------------------------------
# Pure-JAX reference (mirrors the PyTorch forward exactly, incl. the reshapes)
# ----------------------------------------------------------------------------
def reference_forward(x, params, num_heads=4):
    B, S, H = x.shape
    hd = H // num_heads
    h = jnp.maximum(x @ params["w_in"].T + params["b_in"], 0.0)
    h = h.reshape(B, S, num_heads, hd).reshape(B, S * num_heads, hd)
    f = jnp.maximum(h @ params["w_ff1"].T + params["b_ff1"], 0.0)
    f = f @ params["w_ff2"].T + params["b_ff2"]
    f = f.reshape(B, S, num_heads, hd).reshape(B, S, H)
    y = jnp.maximum(f @ params["w_out"].T + params["b_out"], 0.0)
    return y


if __name__ == "__main__":
    num_heads = 4

    # --- Small smoke-test shape (B=2, S=8, H=32; hd=8 -> block-diag fallback path). ---
    B, S, H = 2, 8, 32
    kx, kp = jax.random.split(jax.random.PRNGKey(0))
    x = jax.random.normal(kx, (B, S, H), jnp.float32)
    params = init_params(kp, H, num_heads)
    y_ref = reference_forward(x, params, num_heads)

    prep_f32 = prepare_weights(params, num_heads=num_heads, compute_dtype=jnp.float32)
    y_f32 = jax.block_until_ready(mh_mixture_forward(x, prep_f32))
    assert y_f32.shape == (B, S, H)
    assert jnp.allclose(y_f32, y_ref, atol=1e-5, rtol=1e-5), "f32 mismatch (H=32)"

    prep_bf16 = prepare_weights(params, num_heads=num_heads, compute_dtype=jnp.bfloat16)
    y_bf16 = jax.block_until_ready(mh_mixture_forward(x, prep_bf16))
    assert y_bf16.shape == (B, S, H)
    assert jnp.allclose(y_bf16, y_ref, atol=1e-1, rtol=1e-1), "bf16 mismatch (H=32)"

    # --- Lane-aligned shape (hd=128): exercises the MXU-width head-packing path. ---
    B2, S2, H2 = 2, 8, 512
    kx2, kp2 = jax.random.split(jax.random.PRNGKey(1))
    x2 = jax.random.normal(kx2, (B2, S2, H2), jnp.float32)
    params2 = init_params(kp2, H2, num_heads)
    y2_ref = reference_forward(x2, params2, num_heads)

    prep2_f32 = prepare_weights(params2, num_heads=num_heads, compute_dtype=jnp.float32)
    y2_f32 = jax.block_until_ready(mh_mixture_forward(x2, prep2_f32))
    assert y2_f32.shape == (B2, S2, H2)
    assert jnp.allclose(y2_f32, y2_ref, atol=5e-3, rtol=5e-3), "f32 mismatch (H=512)"

    prep2_bf16 = prepare_weights(params2, num_heads=num_heads, compute_dtype=jnp.bfloat16)
    y2_bf16 = jax.block_until_ready(mh_mixture_forward(x2, prep2_bf16))
    assert y2_bf16.shape == (B2, S2, H2)
    assert jnp.allclose(y2_bf16, y2_ref, atol=1e-1, rtol=1e-1), "bf16 mismatch (H=512)"

    print("KERNEL_OK")
</pallas_src>

<mosaic_0001>
module attributes {stable_mosaic.version = 11 : i64} {
  func.func @_mh_mixture_kernel(%arg0: i32, %arg1: memref<16x32xf32, #tpu.memory_space<vmem>>, %arg2: memref<32x32xf32, #tpu.memory_space<vmem>>, %arg3: memref<1x32xf32, #tpu.memory_space<vmem>>, %arg4: memref<32x32xf32, #tpu.memory_space<vmem>>, %arg5: memref<1x32xf32, #tpu.memory_space<vmem>>, %arg6: memref<32x32xf32, #tpu.memory_space<vmem>>, %arg7: memref<1x32xf32, #tpu.memory_space<vmem>>, %arg8: memref<32x32xf32, #tpu.memory_space<vmem>>, %arg9: memref<1x32xf32, #tpu.memory_space<vmem>>, %arg10: memref<16x32xf32, #tpu.memory_space<vmem>>) attributes {dimension_semantics = [#tpu.dimension_semantics<parallel>], iteration_bounds = array<i64: 1>, scalar_prefetch = 0 : i64, scratch_operands = 0 : i64, tpu.core_type = #tpu.core_type<tc>, window_params = [{transform_indices = @transform_0, window_bounds = array<i64: 16, 32>}, {pipeline_mode = #tpu.pipeline_mode<synchronous>, transform_indices = @transform_1, window_bounds = array<i64: 32, 32>}, {pipeline_mode = #tpu.pipeline_mode<synchronous>, transform_indices = @transform_2, window_bounds = array<i64: 1, 32>}, {pipeline_mode = #tpu.pipeline_mode<synchronous>, transform_indices = @transform_3, window_bounds = array<i64: 32, 32>}, {pipeline_mode = #tpu.pipeline_mode<synchronous>, transform_indices = @transform_4, window_bounds = array<i64: 1, 32>}, {pipeline_mode = #tpu.pipeline_mode<synchronous>, transform_indices = @transform_5, window_bounds = array<i64: 32, 32>}, {pipeline_mode = #tpu.pipeline_mode<synchronous>, transform_indices = @transform_6, window_bounds = array<i64: 1, 32>}, {pipeline_mode = #tpu.pipeline_mode<synchronous>, transform_indices = @transform_7, window_bounds = array<i64: 32, 32>}, {pipeline_mode = #tpu.pipeline_mode<synchronous>, transform_indices = @transform_8, window_bounds = array<i64: 1, 32>}, {transform_indices = @transform_9, window_bounds = array<i64: 16, 32>}]} {
    %c0 = arith.constant 0 : index
    %c0_0 = arith.constant 0 : index
    %0 = vector.load %arg1[%c0, %c0_0] : memref<16x32xf32, #tpu.memory_space<vmem>>, vector<16x32xf32>
    %c0_1 = arith.constant 0 : index
    %c0_2 = arith.constant 0 : index
    %1 = vector.load %arg2[%c0_1, %c0_2] : memref<32x32xf32, #tpu.memory_space<vmem>>, vector<32x32xf32>
    %cst = arith.constant dense<0.000000e+00> : vector<16x32xf32>
    %2 = tpu.matmul %0, %1, %cst {dimension_numbers = #tpu.dot_dimension_numbers<[1], [0], [0], [1], [0, 0, 1, 1], [], []>} : vector<16x32xf32>, vector<32x32xf32>, vector<16x32xf32> -> vector<16x32xf32>
    %c0_3 = arith.constant 0 : index
    %c0_4 = arith.constant 0 : index
    %3 = vector.load %arg3[%c0_3, %c0_4] : memref<1x32xf32, #tpu.memory_space<vmem>>, vector<1x32xf32>
    %4 = vector.broadcast %3 : vector<1x32xf32> to vector<16x32xf32>
    %5 = arith.addf %2, %4 : vector<16x32xf32>
    %cst_5 = arith.constant 0.000000e+00 : f32
    %6 = vector.broadcast %cst_5 : f32 to vector<16x32xf32>
    %7 = arith.maximumf %5, %6 : vector<16x32xf32>
    %c0_6 = arith.constant 0 : index
    %c0_7 = arith.constant 0 : index
    %8 = vector.load %arg4[%c0_6, %c0_7] : memref<32x32xf32, #tpu.memory_space<vmem>>, vector<32x32xf32>
    %c0_8 = arith.constant 0 : index
    %c0_9 = arith.constant 0 : index
    %9 = vector.load %arg6[%c0_8, %c0_9] : memref<32x32xf32, #tpu.memory_space<vmem>>, vector<32x32xf32>
    %c0_10 = arith.constant 0 : index
    %c0_11 = arith.constant 0 : index
    %10 = vector.load %arg5[%c0_10, %c0_11] : memref<1x32xf32, #tpu.memory_space<vmem>>, vector<1x32xf32>
    %11 = vector.shape_cast %10 : vector<1x32xf32> to vector<1x32xf32>
    %12 = vector.broadcast %11 : vector<1x32xf32> to vector<16x32xf32>
    %c0_12 = arith.constant 0 : index
    %c0_13 = arith.constant 0 : index
    %13 = vector.load %arg7[%c0_12, %c0_13] : memref<1x32xf32, #tpu.memory_space<vmem>>, vector<1x32xf32>
    %14 = vector.shape_cast %13 : vector<1x32xf32> to vector<1x32xf32>
    %15 = vector.broadcast %14 : vector<1x32xf32> to vector<16x32xf32>
    %cst_14 = arith.constant dense<0.000000e+00> : vector<16x32xf32>
    %16 = tpu.matmul %7, %8, %cst_14 {dimension_numbers = #tpu.dot_dimension_numbers<[1], [0], [0], [1], [0, 0, 1, 1], [], []>} : vector<16x32xf32>, vector<32x32xf32>, vector<16x32xf32> -> vector<16x32xf32>
    %17 = arith.addf %16, %12 : vector<16x32xf32>
    %cst_15 = arith.constant 0.000000e+00 : f32
    %18 = vector.broadcast %cst_15 : f32 to vector<16x32xf32>
    %19 = arith.maximumf %17, %18 : vector<16x32xf32>
    %cst_16 = arith.constant dense<0.000000e+00> : vector<16x32xf32>
    %20 = tpu.matmul %19, %9, %cst_16 {dimension_numbers = #tpu.dot_dimension_numbers<[1], [0], [0], [1], [0, 0, 1, 1], [], []>} : vector<16x32xf32>, vector<32x32xf32>, vector<16x32xf32> -> vector<16x32xf32>
    %21 = arith.addf %20, %15 : vector<16x32xf32>
    %c0_17 = arith.constant 0 : index
    %c0_18 = arith.constant 0 : index
    %22 = vector.load %arg8[%c0_17, %c0_18] : memref<32x32xf32, #tpu.memory_space<vmem>>, vector<32x32xf32>
    %cst_19 = arith.constant dense<0.000000e+00> : vector<16x32xf32>
    %23 = tpu.matmul %21, %22, %cst_19 {dimension_numbers = #tpu.dot_dimension_numbers<[1], [0], [0], [1], [0, 0, 1, 1], [], []>} : vector<16x32xf32>, vector<32x32xf32>, vector<16x32xf32> -> vector<16x32xf32>
    %c0_20 = arith.constant 0 : index
    %c0_21 = arith.constant 0 : index
    %24 = vector.load %arg9[%c0_20, %c0_21] : memref<1x32xf32, #tpu.memory_space<vmem>>, vector<1x32xf32>
    %25 = vector.broadcast %24 : vector<1x32xf32> to vector<16x32xf32>
    %26 = arith.addf %23, %25 : vector<16x32xf32>
    %cst_22 = arith.constant 0.000000e+00 : f32
    %27 = vector.broadcast %cst_22 : f32 to vector<16x32xf32>
    %28 = arith.maximumf %26, %27 : vector<16x32xf32>
    %c0_23 = arith.constant 0 : index
    %c0_24 = arith.constant 0 : index
    %29 = vector.load %arg10[%c0_23, %c0_24] : memref<16x32xf32, #tpu.memory_space<vmem>>, vector<16x32xf32>
    tpu.vector_store %arg10[%c0_23, %c0_24], %28 {strides = array<i32>} : memref<16x32xf32, #tpu.memory_space<vmem>>, vector<16x32xf32>,
    return
  }
  func.func @transform_0(%arg0: i32) -> (i32, i32) {
    %c0_i32 = arith.constant 0 : i32
    %c0_i32_0 = arith.constant 0 : i32
    return %arg0, %c0_i32 : i32, i32
  }
  func.func @transform_1(%arg0: i32) -> (i32, i32) {
    %c0_i32 = arith.constant 0 : i32
    %c0_i32_0 = arith.constant 0 : i32
    %c0_i32_1 = arith.constant 0 : i32
    return %c0_i32, %c0_i32_0 : i32, i32
  }
  func.func @transform_2(%arg0: i32) -> (i32, i32) {
    %c0_i32 = arith.constant 0 : i32
    %c0_i32_0 = arith.constant 0 : i32
    %c0_i32_1 = arith.constant 0 : i32
    return %c0_i32, %c0_i32_0 : i32, i32
  }
  func.func @transform_3(%arg0: i32) -> (i32, i32) {
    %c0_i32 = arith.constant 0 : i32
    %c0_i32_0 = arith.constant 0 : i32
    %c0_i32_1 = arith.constant 0 : i32
    return %c0_i32, %c0_i32_0 : i32, i32
  }
  func.func @transform_4(%arg0: i32) -> (i32, i32) {
    %c0_i32 = arith.constant 0 : i32
    %c0_i32_0 = arith.constant 0 : i32
    %c0_i32_1 = arith.constant 0 : i32
    return %c0_i32, %c0_i32_0 : i32, i32
  }
  func.func @transform_5(%arg0: i32) -> (i32, i32) {
    %c0_i32 = arith.constant 0 : i32
    %c0_i32_0 = arith.constant 0 : i32
    %c0_i32_1 = arith.constant 0 : i32
    return %c0_i32, %c0_i32_0 : i32, i32
  }
  func.func @transform_6(%arg0: i32) -> (i32, i32) {
    %c0_i32 = arith.constant 0 : i32
    %c0_i32_0 = arith.constant 0 : i32
    %c0_i32_1 = arith.constant 0 : i32
    return %c0_i32, %c0_i32_0 : i32, i32
  }
  func.func @transform_7(%arg0: i32) -> (i32, i32) {
    %c0_i32 = arith.constant 0 : i32
    %c0_i32_0 = arith.constant 0 : i32
    %c0_i32_1 = arith.constant 0 : i32
    return %c0_i32, %c0_i32_0 : i32, i32
  }
  func.func @transform_8(%arg0: i32) -> (i32, i32) {
    %c0_i32 = arith.constant 0 : i32
    %c0_i32_0 = arith.constant 0 : i32
    %c0_i32_1 = arith.constant 0 : i32
    return %c0_i32, %c0_i32_0 : i32, i32
  }
  func.func @transform_9(%arg0: i32) -> (i32, i32) {
    %c0_i32 = arith.constant 0 : i32
    %c0_i32_0 = arith.constant 0 : i32
    return %arg0, %c0_i32 : i32, i32
  }
}

module attributes {stable_mosaic.version = 11 : i64} {
  func.func @_mh_mixture_kernel(%arg0: i32, %arg1: memref<16x32xf32, #tpu.memory_space<vmem>>, %arg2: memref<32x32xf32, #tpu.memory_space<vmem>>, %arg3: memref<1x32xf32, #tpu.memory_space<vmem>>, %arg4: memref<32x32xf32, #tpu.memory_space<vmem>>, %arg5: memref<1x32xf32, #tpu.memory_space<vmem>>, %arg6: memref<32x32xf32, #tpu.memory_space<vmem>>, %arg7: memref<1x32xf32, #tpu.memory_space<vmem>>, %arg8: memref<32x32xf32, #tpu.memory_space<vmem>>, %arg9: memref<1x32xf32, #tpu.memory_space<vmem>>, %arg10: memref<16x32xf32, #tpu.memory_space<vmem>>) attributes {dimension_semantics = [#tpu.dimension_semantics<parallel>], iteration_bounds = array<i64: 1>, scalar_prefetch = 0 : i64, scratch_operands = 0 : i64, tpu.core_type = #tpu.core_type<tc>, window_params = [{transform_indices = @transform_0, window_bounds = array<i64: 16, 32>}, {pipeline_mode = #tpu.pipeline_mode<synchronous>, transform_indices = @transform_1, window_bounds = array<i64: 32, 32>}, {pipeline_mode = #tpu.pipeline_mode<synchronous>, transform_indices = @transform_2, window_bounds = array<i64: 1, 32>}, {pipeline_mode = #tpu.pipeline_mode<synchronous>, transform_indices = @transform_3, window_bounds = array<i64: 32, 32>}, {pipeline_mode = #tpu.pipeline_mode<synchronous>, transform_indices = @transform_4, window_bounds = array<i64: 1, 32>}, {pipeline_mode = #tpu.pipeline_mode<synchronous>, transform_indices = @transform_5, window_bounds = array<i64: 32, 32>}, {pipeline_mode = #tpu.pipeline_mode<synchronous>, transform_indices = @transform_6, window_bounds = array<i64: 1, 32>}, {pipeline_mode = #tpu.pipeline_mode<synchronous>, transform_indices = @transform_7, window_bounds = array<i64: 32, 32>}, {pipeline_mode = #tpu.pipeline_mode<synchronous>, transform_indices = @transform_8, window_bounds = array<i64: 1, 32>}, {transform_indices = @transform_9, window_bounds = array<i64: 16, 32>}]} {
    %c0 = arith.constant 0 : index
    %c0_0 = arith.constant 0 : index
    %0 = vector.load %arg1[%c0, %c0_0] : memref<16x32xf32, #tpu.memory_space<vmem>>, vector<16x32xf32>
    %c0_1 = arith.constant 0 : index
    %c0_2 = arith.constant 0 : index
    %1 = vector.load %arg2[%c0_1, %c0_2] : memref<32x32xf32, #tpu.memory_space<vmem>>, vector<32x32xf32>
    %cst = arith.constant dense<0.000000e+00> : vector<16x32xf32>
    %2 = tpu.matmul %0, %1, %cst {dimension_numbers = #tpu.dot_dimension_numbers<[1], [0], [0], [1], [0, 0, 1, 1], [], []>} : vector<16x32xf32>, vector<32x32xf32>, vector<16x32xf32> -> vector<16x32xf32>
    %c0_3 = arith.constant 0 : index
    %c0_4 = arith.constant 0 : index
    %3 = vector.load %arg3[%c0_3, %c0_4] : memref<1x32xf32, #tpu.memory_space<vmem>>, vector<1x32xf32>
    %4 = vector.broadcast %3 : vector<1x32xf32> to vector<16x32xf32>
    %5 = arith.addf %2, %4 : vector<16x32xf32>
    %cst_5 = arith.constant 0.000000e+00 : f32
    %6 = vector.broadcast %cst_5 : f32 to vector<16x32xf32>
    %7 = arith.maximumf %5, %6 : vector<16x32xf32>
    %c0_6 = arith.constant 0 : index
    %c0_7 = arith.constant 0 : index
    %8 = vector.load %arg4[%c0_6, %c0_7] : memref<32x32xf32, #tpu.memory_space<vmem>>, vector<32x32xf32>
    %c0_8 = arith.constant 0 : index
    %c0_9 = arith.constant 0 : index
    %9 = vector.load %arg6[%c0_8, %c0_9] : memref<32x32xf32, #tpu.memory_space<vmem>>, vector<32x32xf32>
    %c0_10 = arith.constant 0 : index
    %c0_11 = arith.constant 0 : index
    %10 = vector.load %arg5[%c0_10, %c0_11] : memref<1x32xf32, #tpu.memory_space<vmem>>, vector<1x32xf32>
    %11 = vector.shape_cast %10 : vector<1x32xf32> to vector<1x32xf32>
    %12 = vector.broadcast %11 : vector<1x32xf32> to vector<16x32xf32>
    %c0_12 = arith.constant 0 : index
    %c0_13 = arith.constant 0 : index
    %13 = vector.load %arg7[%c0_12, %c0_13] : memref<1x32xf32, #tpu.memory_space<vmem>>, vector<1x32xf32>
    %14 = vector.shape_cast %13 : vector<1x32xf32> to vector<1x32xf32>
    %15 = vector.broadcast %14 : vector<1x32xf32> to vector<16x32xf32>
    %cst_14 = arith.constant dense<0.000000e+00> : vector<16x32xf32>
    %16 = tpu.matmul %7, %8, %cst_14 {dimension_numbers = #tpu.dot_dimension_numbers<[1], [0], [0], [1], [0, 0, 1, 1], [], []>} : vector<16x32xf32>, vector<32x32xf32>, vector<16x32xf32> -> vector<16x32xf32>
    %17 = arith.addf %16, %12 : vector<16x32xf32>
    %cst_15 = arith.constant 0.000000e+00 : f32
    %18 = vector.broadcast %cst_15 : f32 to vector<16x32xf32>
    %19 = arith.maximumf %17, %18 : vector<16x32xf32>
    %cst_16 = arith.constant dense<0.000000e+00> : vector<16x32xf32>
    %20 = tpu.matmul %19, %9, %cst_16 {dimension_numbers = #tpu.dot_dimension_numbers<[1], [0], [0], [1], [0, 0, 1, 1], [], []>} : vector<16x32xf32>, vector<32x32xf32>, vector<16x32xf32> -> vector<16x32xf32>
    %21 = arith.addf %20, %15 : vector<16x32xf32>
    %c0_17 = arith.constant 0 : index
    %c0_18 = arith.constant 0 : index
    %22 = vector.load %arg8[%c0_17, %c0_18] : memref<32x32xf32, #tpu.memory_space<vmem>>, vector<32x32xf32>
    %cst_19 = arith.constant dense<0.000000e+00> : vector<16x32xf32>
    %23 = tpu.matmul %21, %22, %cst_19 {dimension_numbers = #tpu.dot_dimension_numbers<[1], [0], [0], [1], [0, 0, 1, 1], [], []>} : vector<16x32xf32>, vector<32x32xf32>, vector<16x32xf32> -> vector<16x32xf32>
    %c0_20 = arith.constant 0 : index
    %c0_21 = arith.constant 0 : index
    %24 = vector.load %arg9[%c0_20, %c0_21] : memref<1x32xf32, #tpu.memory_space<vmem>>, vector<1x32xf32>
    %25 = vector.broadcast %24 : vector<1x32xf32> to vector<16x32xf32>
    %26 = arith.addf %23, %25 : vector<16x32xf32>
    %cst_22 = arith.constant 0.000000e+00 : f32
    %27 = vector.broadcast %cst_22 : f32 to vector<16x32xf32>
    %28 = arith.maximumf %26, %27 : vector<16x32xf32>
    %c0_23 = arith.constant 0 : index
    %c0_24 = arith.constant 0 : index
    %29 = vector.load %arg10[%c0_23, %c0_24] : memref<16x32xf32, #tpu.memory_space<vmem>>, vector<16x32xf32>
    tpu.vector_store %arg10[%c0_23, %c0_24], %28 {strides = array<i32>} : memref<16x32xf32, #tpu.memory_space<vmem>>, vector<16x32xf32>,
    return
  }
  func.func @transform_0(%arg0: i32) -> (i32, i32) {
    %c0_i32 = arith.constant 0 : i32
    %c0_i32_0 = arith.constant 0 : i32
    return %arg0, %c0_i32 : i32, i32
  }
  func.func @transform_1(%arg0: i32) -> (i32, i32) {
    %c0_i32 = arith.constant 0 : i32
    %c0_i32_0 = arith.constant 0 : i32
    %c0_i32_1 = arith.constant 0 : i32
    return %c0_i32, %c0_i32_0 : i32, i32
  }
  func.func @transform_2(%arg0: i32) -> (i32, i32) {
    %c0_i32 = arith.constant 0 : i32
    %c0_i32_0 = arith.constant 0 : i32
    %c0_i32_1 = arith.constant 0 : i32
    return %c0_i32, %c0_i32_0 : i32, i32
  }
  func.func @transform_3(%arg0: i32) -> (i32, i32) {
    %c0_i32 = arith.constant 0 : i32
    %c0_i32_0 = arith.constant 0 : i32
    %c0_i32_1 = arith.constant 0 : i32
    return %c0_i32, %c0_i32_0 : i32, i32
  }
  func.func @transform_4(%arg0: i32) -> (i32, i32) {
    %c0_i32 = arith.constant 0 : i32
    %c0_i32_0 = arith.constant 0 : i32
    %c0_i32_1 = arith.constant 0 : i32
    return %c0_i32, %c0_i32_0 : i32, i32
  }
  func.func @transform_5(%arg0: i32) -> (i32, i32) {
    %c0_i32 = arith.constant 0 : i32
    %c0_i32_0 = arith.constant 0 : i32
    %c0_i32_1 = arith.constant 0 : i32
    return %c0_i32, %c0_i32_0 : i32, i32
  }
  func.func @transform_6(%arg0: i32) -> (i32, i32) {
    %c0_i32 = arith.constant 0 : i32
    %c0_i32_0 = arith.constant 0 : i32
    %c0_i32_1 = arith.constant 0 : i32
    return %c0_i32, %c0_i32_0 : i32, i32
  }
  func.func @transform_7(%arg0: i32) -> (i32, i32) {
    %c0_i32 = arith.constant 0 : i32
    %c0_i32_0 = arith.constant 0 : i32
    %c0_i32_1 = arith.constant 0 : i32
    return %c0_i32, %c0_i32_0 : i32, i32
  }
  func.func @transform_8(%arg0: i32) -> (i32, i32) {
    %c0_i32 = arith.constant 0 : i32
    %c0_i32_0 = arith.constant 0 : i32
    %c0_i32_1 = arith.constant 0 : i32
    return %c0_i32, %c0_i32_0 : i32, i32
  }
  func.func @transform_9(%arg0: i32) -> (i32, i32) {
    %c0_i32 = arith.constant 0 : i32
    %c0_i32_0 = arith.constant 0 : i32
    return %arg0, %c0_i32 : i32, i32
  }
}

</mosaic_0001>

<bundles_post_ra>
// kernel: tpu_custom_call.1
= control target key start
LH: loop header
LB: loop body
LE: loop exit
PB: predicated region body
PF: predicated region fallthrough
CT: control target
= control target key end

     0   :  { %14 = vsyncpa [#allocation3], 0  ;;  %s831_s0 = inlined_call_operand.hbm [shape: f32[16,32], index: 0, kind: input, shape index: {}]   ;;  %s832_s1 = inlined_call_operand.hbm [shape: f32[32,32], index: 1, kind: input, shape index: {}]   ;;  %s833_s2 = inlined_call_operand.vmem [shape: f32[1,32], index: 2, kind: input, shape index: {}]   ;;  %s834_s3 = inlined_call_operand.hbm [shape: f32[32,32], index: 3, kind: input, shape index: {}]   ;;  %s835_s4 = inlined_call_operand.vmem [shape: f32[1,32], index: 4, kind: input, shape index: {}]   ;;  %s836_s5 = inlined_call_operand.hbm [shape: f32[32,32], index: 5, kind: input, shape index: {}]   ;;  %s837_s6 = inlined_call_operand.vmem [shape: f32[1,32], index: 6, kind: input, shape index: {}]   ;;  %s838_s7 = inlined_call_operand.hbm [shape: f32[32,32], index: 7, kind: input, shape index: {}]   ;;  %s839_s8 = inlined_call_operand.vmem [shape: f32[1,32], index: 8, kind: input, shape index: {}]   ;;  %s840_s9 = inlined_call_operand.hbm [shape: f32[16,32], index: 9, kind: output, shape index: {}]  }
   0x1   :  { %15 = vsyncpa [#allocation6], 0 }
   0x2   :  { %16 = vsyncpa [#allocation9], 0 }
   0x3   :  { %17 = vsyncpa [#allocation4], 0  ;;  %s715_s30 = smov [#allocation5]   ;;  %s716_s11 = smov [#allocation8]  }
   0x4   :  { %s35_s10 = sshll.u32 %s715_s30, 4  ;;  %s63_s12 = sshll.u32 %s716_s11, 4  ;;  %s36_s10 = int_to_ptr.vmem [resolvable:$true] %s35_s10  ;;  %s64_s12 = int_to_ptr.vmem [resolvable:$true] %s63_s12 }
   0x5   :  { %s595_s13 = scalar_lea.vmem %s36_s10, 512  ;;  %p600_p1 = scmp.lt.s32.totalorder %s36_s10, %s36_s10 }
   0x6   :  { %p596_p0 = scmp.ne.s32.totalorder %s36_s10, %s595_s13  ;;  %p601_p2 = scmp.lt.s32.totalorder %s595_s13, %s595_s13 }
   0x8   :  { %p602_p3 = por %p601_p2, %p600_p1 }
   0xa   :  { %p603_p4 = pnand %p602_p3, %p596_p0 }
   0xc   :  { %606 = shalt.err (!%p603_p4)
}
   0xd   :  { %s717_s14 = smov 128   ;;  %s718_s15 = smov 8  }
   0xe   :  { %41 = dma.hbm_to_vmem [thread:$0]  %s832_s1, 512, %s36_s10, [#allocation6], %s717_s14, %s717_s14, %s718_s15  }
   0xf   :  { %s615_s18 = scalar_lea.vmem %s64_s12, 512  ;;  %p620_p6 = scmp.lt.s32.totalorder %s64_s12, %s64_s12 }
  0x10   :  { %p616_p5 = scmp.ne.s32.totalorder %s64_s12, %s615_s18  ;;  %p621_p7 = scmp.lt.s32.totalorder %s615_s18, %s615_s18 }
  0x12   :  { %p622_p8 = por %p621_p7, %p620_p6 }
  0x14   :  { %p623_p9 = pnand %p622_p8, %p616_p5 }
  0x16   :  { %626 = shalt.err (!%p623_p9)
}
  0x17   :  { %69 = dma.hbm_to_vmem [thread:$0]  %s836_s5, 512, %s64_s12, [#allocation9], %s717_s14, %s717_s14, %s718_s15  }
  0x18   :  { %s719_s21 = smov [#allocation2]   ;;  %s720_s23 = smov [#allocation7]  }
  0x19   :  { %s23_s22 = sshll.u32 %s719_s21, 4  ;;  %s49_s24 = sshll.u32 %s720_s23, 4  ;;  %s24_s22 = int_to_ptr.vmem [resolvable:$true] %s23_s22  ;;  %s50_s24 = int_to_ptr.vmem [resolvable:$true] %s49_s24 }
  0x1a   :  { %s635_s1 = scalar_lea.vmem %s24_s22, 256  ;;  %p640_p11 = scmp.lt.s32.totalorder %s24_s22, %s24_s22 }
  0x1b   :  { %p636_p10 = scmp.ne.s32.totalorder %s24_s22, %s635_s1  ;;  %p641_p12 = scmp.lt.s32.totalorder %s635_s1, %s635_s1 }
  0x1d   :  { %p642_p13 = por %p641_p12, %p640_p11 }
  0x1f   :  { %p643_p0 = pnand %p642_p13, %p636_p10 }
  0x21   :  { %646 = shalt.err (!%p643_p0)
}
  0x22   :  { %29 = dma.hbm_to_vmem [thread:$0]  %s831_s0, 256, %s24_s22, [#allocation3], %s717_s14, %s717_s14, %s718_s15  }
  0x23   :  { %s655_s5 = scalar_lea.vmem %s50_s24, 512  ;;  %p660_p2 = scmp.lt.s32.totalorder %s50_s24, %s50_s24 }
  0x24   :  { %p656_p1 = scmp.ne.s32.totalorder %s50_s24, %s655_s5  ;;  %p661_p3 = scmp.lt.s32.totalorder %s655_s5, %s655_s5 }
  0x26   :  { %p662_p4 = por %p661_p3, %p660_p2 }
  0x28   :  { %p663_p5 = pnand %p662_p4, %p656_p1 }
  0x2a   :  { %666 = shalt.err (!%p663_p5)
}
  0x2b   :  { %55 = dma.hbm_to_vmem [thread:$0]  %s834_s3, 512, %s50_s24, [#allocation6], %s717_s14, %s717_s14, %s718_s15  }
  0x2c   :  { %s721_s29 = smov [#allocation10]  }
  0x2d   :  { %s77_s30 = sshll.u32 %s721_s29, 4  ;;  %s78_s30 = int_to_ptr.vmem [resolvable:$true] %s77_s30 }
  0x2e   :  { %s675_s10 = scalar_lea.vmem %s78_s30, 512  ;;  %p680_p7 = scmp.lt.s32.totalorder %s78_s30, %s78_s30 }
  0x2f   :  { %p676_p6 = scmp.ne.s32.totalorder %s78_s30, %s675_s10  ;;  %p681_p8 = scmp.lt.s32.totalorder %s675_s10, %s675_s10 }
  0x31   :  { %p682_p9 = por %p681_p8, %p680_p7 }
  0x33   :  { %p683_p10 = pnand %p682_p9, %p676_p6 }
  0x35   :  { %686 = shalt.err (!%p683_p10)
}
  0x36   :  { %83 = dma.hbm_to_vmem [thread:$0]  %s838_s7, 512, %s78_s30, [#allocation9], %s717_s14, %s717_s14, %s718_s15  }
  0x37   :  { %707 = dma.done.wait [#allocation3], 256  }
  0x38   :  { %708 = vsyncadd [#allocation3], 4294967040 }
  0x39   :  { %709 = dma.done.wait [#allocation6], 1024  }
  0x3a   :  { %710 = vsyncadd [#allocation6], 4294966272 }
  0x3b   :  { %711 = dma.done.wait [#allocation9], 1024  }
  0x3c   :  { %712 = vsyncadd [#allocation9], 4294966272  ;;  %vm114_vm0 = vcmask 261120   ;;  %v106_v0 = vld [vmem:[#allocation5 + $0x18] sm:$0xff]  ;;  %v105_v1 = vld [vmem:[#allocation5 + $0x10] sm:$0xff]  ;;  %s722_s18 = smov [#allocation11]  }
  0x3d   :  { %535 = vmatprep.subr.mxu0 %v106_v0  ;;  %v101_v2 = vld [vmem:[#allocation2] sm:$0xff]  ;;  %v104_v3 = vld [vmem:[#allocation5 + $0x8] sm:$0xff]  ;;  %v103_v4 = vld [vmem:[#allocation5] sm:$0xff]  ;;  %s485_s19 = sshll.u32 %s722_s18, 4  ;;  %s486_s19 = int_to_ptr.vmem [resolvable:$true] %s485_s19 }
  0x3e   :  { %536 = vmatpush3.msra.mxu0 %v106_v0  ;;  %543 = vmatprep.mubr.msk.f32.mxu0 %vm114_vm0, %v101_v2  ;;  %v102_v5 = vld [vmem:[#allocation2 + $0x8] sm:$0xff]  ;;  %v200_v7 = vld [vmem:[#allocation7 + $0x10] sm:$0xff]  ;;  %v199_v8 = vld [vmem:[#allocation7 + $0x8] sm:$0xff]  ;;  %p692_p12 = scmp.lt.s32.totalorder %s486_s19, %s486_s19 }
  0x3f   :  { %537 = vmatprep.subr.mxu0 %v105_v1  ;;  %v201_v6 = vld [vmem:[#allocation7 + $0x18] sm:$0xff]  ;;  %v198_v9 = vld [vmem:[#allocation7] sm:$0xff]  ;;  %v499_v10 = vld [vmem:[%s833_s2] ss:$0 sm:$0xff] }
  0x40   :  { %538 = vmatpush3.msra.mxu0 %v105_v1  ;;  %546 = vmatprep.subr.mxu1 %v201_v6  ;;  %v205_v17 = vld [vmem:[#allocation8 + $0x18] sm:$0xff]  ;;  %v204_v18 = vld [vmem:[#allocation8 + $0x10] sm:$0xff]  ;;  %v203_v19 = vld [vmem:[#allocation8 + $0x8] sm:$0xff] }
  0x41   :  { %539 = vmatprep.subr.mxu0 %v104_v3  ;;  %547 = vmatpush3.msra.mxu1 %v201_v6  ;;  %v202_v20 = vld [vmem:[#allocation8] sm:$0xff]  ;;  %v387_v21 = vld [vmem:[#allocation10 + $0x18] sm:$0xff]  ;;  %v502_v22 = vld [vmem:[%s835_s4] ss:$0 sm:$0xff] }
  0x42   :  { %540 = vmatpush3.msra.mxu0 %v104_v3  ;;  %548 = vmatprep.subr.mxu1 %v200_v7  ;;  %v386_v29 = vld [vmem:[#allocation10 + $0x10] sm:$0xff]  ;;  %v385_v30 = vld [vmem:[#allocation10 + $0x8] sm:$0xff]  ;;  %v384_v31 = vld [vmem:[#allocation10] sm:$0xff] }
  0x43   :  { %541 = vmatprep.subr.mxu0 %v103_v4  ;;  %549 = vmatpush3.msra.mxu1 %v200_v7  ;;  %v503_v33 = vld [vmem:[%s837_s6] ss:$0 sm:$0xff]  ;;  %s687_s6 = scalar_lea.vmem %s486_s19, 256 }
  0x44   :  { %542 = vmatpush3.msra.mxu0 %v103_v4  ;;  %550 = vmatprep.subr.mxu1 %v199_v8  ;;  %v508_v37 = vld [vmem:[%s839_s8] ss:$0 sm:$0xff]  ;;  %p688_p11 = scmp.ne.s32.totalorder %s486_s19, %s687_s6  ;;  %p693_p13 = scmp.lt.s32.totalorder %s687_s6, %s687_s6 }
  0x45   :  { %544 = vmatmul.mubr.msk.f32.vlgmr.msra.gmra.mxu0 %vm114_vm0, %v102_v5  ;;  %551 = vmatpush3.msra.mxu1 %v199_v8 }
  0x46   :  { %552 = vmatprep.subr.mxu1 %v198_v9  ;;  %557 = vmatprep.subr.mxu0 %v205_v17  ;;  %p694_p0 = por %p693_p13, %p692_p12 }
  0x47   :  { %553 = vmatpush3.msra.mxu1 %v198_v9  ;;  %558 = vmatpush3.msra.mxu0 %v205_v17 }
  0x48   :  { %559 = vmatprep.subr.mxu0 %v204_v18  ;;  %568 = vmatprep.subr.mxu1 %v387_v21  ;;  %p695_p1 = pnand %p694_p0, %p688_p11 }
  0x49   :  { %560 = vmatpush3.msra.mxu0 %v204_v18 }
  0x4a   :  { %561 = vmatprep.subr.mxu0 %v203_v19 }
  0x4b   :  { %562 = vmatpush3.msra.mxu0 %v203_v19 }
  0x4c   :  { %563 = vmatprep.subr.mxu0 %v202_v20 }
  0x4d   :  { %564 = vmatpush3.msra.mxu0 %v202_v20 }
 0x105   :  { %v545_v11 = vpop.f32.mrf.mxu0 }
 0x106   :  { %v193_v12 = vadd.f32 %v545_v11, %v499_v10 }
 0x107   :  { %v187_v13 = vpop.f32.mrf.mxu0 }
 0x108   :  { %v188_v14 = vadd.f32 %v499_v10, %v187_v13  ;;  %v197_v16 = vmax.f32 %v193_v12, 0.0 }
 0x10a   :  { %v196_v15 = vmax.f32 %v188_v14, 0.0 }
 0x10c   :  { %554 = vmatprep.mubr.msk.f32.mxu1 %vm114_vm0, %v196_v15 }
 0x10d   :  { %555 = vmatmul.mubr.msk.f32.vlgmr.msra.gmra.mxu1 %vm114_vm0, %v197_v16 }
 0x10e   :  { %569 = vmatpush3.msra.mxu1 %v387_v21 }
 0x10f   :  { %570 = vmatprep.subr.mxu1 %v386_v29 }
 0x110   :  { %571 = vmatpush3.msra.mxu1 %v386_v29 }
 0x111   :  { %572 = vmatprep.subr.mxu1 %v385_v30 }
 0x112   :  { %573 = vmatpush3.msra.mxu1 %v385_v30 }
 0x113   :  { %574 = vmatprep.subr.mxu1 %v384_v31 }
 0x114   :  { %575 = vmatpush3.msra.mxu1 %v384_v31 }
 0x1cd   :  { %v556_v23 = vpop.f32.mrf.mxu1 }
 0x1ce   :  { %v298_v24 = vadd.f32 %v556_v23, %v502_v22 }
 0x1cf   :  { %v292_v25 = vpop.f32.mrf.mxu1 }
 0x1d0   :  { %v293_v26 = vadd.f32 %v502_v22, %v292_v25  ;;  %v302_v28 = vmax.f32 %v298_v24, 0.0 }
 0x1d2   :  { %v301_v27 = vmax.f32 %v293_v26, 0.0 }
 0x1d4   :  { %565 = vmatprep.mubr.msk.f32.mxu0 %vm114_vm0, %v301_v27 }
 0x1d5   :  { %566 = vmatmul.mubr.msk.f32.vlgmr.msra.gmra.mxu0 %vm114_vm0, %v302_v28 }
 0x295   :  { %v567_v32 = vpop.f32.mrf.mxu0 }
 0x296   :  { %v381_v36 = vadd.f32 %v567_v32, %v503_v33 }
 0x297   :  { %v375_v34 = vpop.f32.mrf.mxu0 }
 0x298   :  { %v376_v35 = vadd.f32 %v503_v33, %v375_v34 }
 0x29a   :  { %576 = vmatprep.mubr.msk.f32.mxu1 %vm114_vm0, %v376_v35 }
 0x29b   :  { %577 = vmatmul.mubr.msk.f32.vlgmr.msra.gmra.mxu1 %vm114_vm0, %v381_v36 }
 0x35b   :  { %v578_v38 = vpop.f32.mrf.mxu1 }
 0x35c   :  { %v473_v39 = vadd.f32 %v578_v38, %v508_v37 }
 0x35d   :  { %v467_v40 = vpop.f32.mrf.mxu1 }
 0x35e   :  { %v477_v41 = vmax.f32 %v473_v39, 0.0  ;;  %v468_v42 = vadd.f32 %v508_v37, %v467_v40 }
 0x360   :  { %479 = vst.msk [vmem:[#allocation11 + $0x8] sm:$0xff] %vm114_vm0, %v477_v41  ;;  %v476_v43 = vmax.f32 %v468_v42, 0.0 }
 0x362   :  { %478 = vst.msk [vmem:[#allocation11] sm:$0xff] %vm114_vm0, %v476_v43 }
 0x363   :  { %698 = shalt.err (!%p695_p1)
}
 0x364   :  { %491 = dma.vmem_to_hbm [thread:$0]  %s486_s19, 256, %s840_s9, [#allocation4], %s717_s14, %s717_s14, %s718_s15  }
 0x365   :  { %713 = dma.done.wait [#allocation4], 256  }
 0x366   :  { %714 = vsyncadd [#allocation4], 4294967040 }
 0x367   :  { %495 = vsyncpa [#allocation3], 1 }
 0x368   :  { %496 = vsyncpa [#allocation6], 1 }
 0x369   :  { %497 = vsyncpa [#allocation9], 1 }
 0x36a   :  { %498 = vsyncpa [#allocation4], 1 }

// kernel: tpu_custom_call.1
= control target key start
LH: loop header
LB: loop body
LE: loop exit
PB: predicated region body
PF: predicated region fallthrough
CT: control target
= control target key end

     0   :  { %14 = vsyncpa [#allocation3], 0  ;;  %s831_s0 = inlined_call_operand.hbm [shape: f32[16,32], index: 0, kind: input, shape index: {}]   ;;  %s832_s1 = inlined_call_operand.hbm [shape: f32[32,32], index: 1, kind: input, shape index: {}]   ;;  %s833_s2 = inlined_call_operand.vmem [shape: f32[1,32], index: 2, kind: input, shape index: {}]   ;;  %s834_s3 = inlined_call_operand.hbm [shape: f32[32,32], index: 3, kind: input, shape index: {}]   ;;  %s835_s4 = inlined_call_operand.vmem [shape: f32[1,32], index: 4, kind: input, shape index: {}]   ;;  %s836_s5 = inlined_call_operand.hbm [shape: f32[32,32], index: 5, kind: input, shape index: {}]   ;;  %s837_s6 = inlined_call_operand.vmem [shape: f32[1,32], index: 6, kind: input, shape index: {}]   ;;  %s838_s7 = inlined_call_operand.hbm [shape: f32[32,32], index: 7, kind: input, shape index: {}]   ;;  %s839_s8 = inlined_call_operand.vmem [shape: f32[1,32], index: 8, kind: input, shape index: {}]   ;;  %s840_s9 = inlined_call_operand.hbm [shape: f32[16,32], index: 9, kind: output, shape index: {}]  }
   0x1   :  { %15 = vsyncpa [#allocation6], 0 }
   0x2   :  { %16 = vsyncpa [#allocation9], 0 }
   0x3   :  { %17 = vsyncpa [#allocation4], 0  ;;  %s715_s30 = smov [#allocation5]   ;;  %s716_s11 = smov [#allocation8]  }
   0x4   :  { %s35_s10 = sshll.u32 %s715_s30, 4  ;;  %s63_s12 = sshll.u32 %s716_s11, 4  ;;  %s36_s10 = int_to_ptr.vmem [resolvable:$true] %s35_s10  ;;  %s64_s12 = int_to_ptr.vmem [resolvable:$true] %s63_s12 }
   0x5   :  { %s595_s13 = scalar_lea.vmem %s36_s10, 512  ;;  %p600_p1 = scmp.lt.s32.totalorder %s36_s10, %s36_s10 }
   0x6   :  { %p596_p0 = scmp.ne.s32.totalorder %s36_s10, %s595_s13  ;;  %p601_p2 = scmp.lt.s32.totalorder %s595_s13, %s595_s13 }
   0x8   :  { %p602_p3 = por %p601_p2, %p600_p1 }
   0xa   :  { %p603_p4 = pnand %p602_p3, %p596_p0 }
   0xc   :  { %606 = shalt.err (!%p603_p4)
}
   0xd   :  { %s717_s14 = smov 128   ;;  %s718_s15 = smov 8  }
   0xe   :  { %41 = dma.hbm_to_vmem [thread:$0]  %s832_s1, 512, %s36_s10, [#allocation6], %s717_s14, %s717_s14, %s718_s15  }
   0xf   :  { %s615_s18 = scalar_lea.vmem %s64_s12, 512  ;;  %p620_p6 = scmp.lt.s32.totalorder %s64_s12, %s64_s12 }
  0x10   :  { %p616_p5 = scmp.ne.s32.totalorder %s64_s12, %s615_s18  ;;  %p621_p7 = scmp.lt.s32.totalorder %s615_s18, %s615_s18 }
  0x12   :  { %p622_p8 = por %p621_p7, %p620_p6 }
  0x14   :  { %p623_p9 = pnand %p622_p8, %p616_p5 }
  0x16   :  { %626 = shalt.err (!%p623_p9)
}
  0x17   :  { %69 = dma.hbm_to_vmem [thread:$0]  %s836_s5, 512, %s64_s12, [#allocation9], %s717_s14, %s717_s14, %s718_s15  }
  0x18   :  { %s719_s21 = smov [#allocation2]   ;;  %s720_s23 = smov [#allocation7]  }
  0x19   :  { %s23_s22 = sshll.u32 %s719_s21, 4  ;;  %s49_s24 = sshll.u32 %s720_s23, 4  ;;  %s24_s22 = int_to_ptr.vmem [resolvable:$true] %s23_s22  ;;  %s50_s24 = int_to_ptr.vmem [resolvable:$true] %s49_s24 }
  0x1a   :  { %s635_s1 = scalar_lea.vmem %s24_s22, 256  ;;  %p640_p11 = scmp.lt.s32.totalorder %s24_s22, %s24_s22 }
  0x1b   :  { %p636_p10 = scmp.ne.s32.totalorder %s24_s22, %s635_s1  ;;  %p641_p12 = scmp.lt.s32.totalorder %s635_s1, %s635_s1 }
  0x1d   :  { %p642_p13 = por %p641_p12, %p640_p11 }
  0x1f   :  { %p643_p0 = pnand %p642_p13, %p636_p10 }
  0x21   :  { %646 = shalt.err (!%p643_p0)
}
  0x22   :  { %29 = dma.hbm_to_vmem [thread:$0]  %s831_s0, 256, %s24_s22, [#allocation3], %s717_s14, %s717_s14, %s718_s15  }
  0x23   :  { %s655_s5 = scalar_lea.vmem %s50_s24, 512  ;;  %p660_p2 = scmp.lt.s32.totalorder %s50_s24, %s50_s24 }
  0x24   :  { %p656_p1 = scmp.ne.s32.totalorder %s50_s24, %s655_s5  ;;  %p661_p3 = scmp.lt.s32.totalorder %s655_s5, %s655_s5 }
  0x26   :  { %p662_p4 = por %p661_p3, %p660_p2 }
  0x28   :  { %p663_p5 = pnand %p662_p4, %p656_p1 }
  0x2a   :  { %666 = shalt.err (!%p663_p5)
}
  0x2b   :  { %55 = dma.hbm_to_vmem [thread:$0]  %s834_s3, 512, %s50_s24, [#allocation6], %s717_s14, %s717_s14, %s718_s15  }
  0x2c   :  { %s721_s29 = smov [#allocation10]  }
  0x2d   :  { %s77_s30 = sshll.u32 %s721_s29, 4  ;;  %s78_s30 = int_to_ptr.vmem [resolvable:$true] %s77_s30 }
  0x2e   :  { %s675_s10 = scalar_lea.vmem %s78_s30, 512  ;;  %p680_p7 = scmp.lt.s32.totalorder %s78_s30, %s78_s30 }
  0x2f   :  { %p676_p6 = scmp.ne.s32.totalorder %s78_s30, %s675_s10  ;;  %p681_p8 = scmp.lt.s32.totalorder %s675_s10, %s675_s10 }
  0x31   :  { %p682_p9 = por %p681_p8, %p680_p7 }
  0x33   :  { %p683_p10 = pnand %p682_p9, %p676_p6 }
  0x35   :  { %686 = shalt.err (!%p683_p10)
}
  0x36   :  { %83 = dma.hbm_to_vmem [thread:$0]  %s838_s7, 512, %s78_s30, [#allocation9], %s717_s14, %s717_s14, %s718_s15  }
  0x37   :  { %707 = dma.done.wait [#allocation3], 256  }
  0x38   :  { %708 = vsyncadd [#allocation3], 4294967040 }
  0x39   :  { %709 = dma.done.wait [#allocation6], 1024  }
  0x3a   :  { %710 = vsyncadd [#allocation6], 4294966272 }
  0x3b   :  { %711 = dma.done.wait [#allocation9], 1024  }
  0x3c   :  { %712 = vsyncadd [#allocation9], 4294966272  ;;  %vm114_vm0 = vcmask 261120   ;;  %v106_v0 = vld [vmem:[#allocation5 + $0x18] sm:$0xff]  ;;  %v105_v1 = vld [vmem:[#allocation5 + $0x10] sm:$0xff]  ;;  %s722_s18 = smov [#allocation11]  }
  0x3d   :  { %535 = vmatprep.subr.mxu0 %v106_v0  ;;  %v101_v2 = vld [vmem:[#allocation2] sm:$0xff]  ;;  %v104_v3 = vld [vmem:[#allocation5 + $0x8] sm:$0xff]  ;;  %v103_v4 = vld [vmem:[#allocation5] sm:$0xff]  ;;  %s485_s19 = sshll.u32 %s722_s18, 4  ;;  %s486_s19 = int_to_ptr.vmem [resolvable:$true] %s485_s19 }
  0x3e   :  { %536 = vmatpush3.msra.mxu0 %v106_v0  ;;  %543 = vmatprep.mubr.msk.f32.mxu0 %vm114_vm0, %v101_v2  ;;  %v102_v5 = vld [vmem:[#allocation2 + $0x8] sm:$0xff]  ;;  %v200_v7 = vld [vmem:[#allocation7 + $0x10] sm:$0xff]  ;;  %v199_v8 = vld [vmem:[#allocation7 + $0x8] sm:$0xff]  ;;  %p692_p12 = scmp.lt.s32.totalorder %s486_s19, %s486_s19 }
  0x3f   :  { %537 = vmatprep.subr.mxu0 %v105_v1  ;;  %v201_v6 = vld [vmem:[#allocation7 + $0x18] sm:$0xff]  ;;  %v198_v9 = vld [vmem:[#allocation7] sm:$0xff]  ;;  %v499_v10 = vld [vmem:[%s833_s2] ss:$0 sm:$0xff] }
  0x40   :  { %538 = vmatpush3.msra.mxu0 %v105_v1  ;;  %546 = vmatprep.subr.mxu1 %v201_v6  ;;  %v205_v17 = vld [vmem:[#allocation8 + $0x18] sm:$0xff]  ;;  %v204_v18 = vld [vmem:[#allocation8 + $0x10] sm:$0xff]  ;;  %v203_v19 = vld [vmem:[#allocation8 + $0x8] sm:$0xff] }
  0x41   :  { %539 = vmatprep.subr.mxu0 %v104_v3  ;;  %547 = vmatpush3.msra.mxu1 %v201_v6  ;;  %v202_v20 = vld [vmem:[#allocation8] sm:$0xff]  ;;  %v387_v21 = vld [vmem:[#allocation10 + $0x18] sm:$0xff]  ;;  %v502_v22 = vld [vmem:[%s835_s4] ss:$0 sm:$0xff] }
  0x42   :  { %540 = vmatpush3.msra.mxu0 %v104_v3  ;;  %548 = vmatprep.subr.mxu1 %v200_v7  ;;  %v386_v29 = vld [vmem:[#allocation10 + $0x10] sm:$0xff]  ;;  %v385_v30 = vld [vmem:[#allocation10 + $0x8] sm:$0xff]  ;;  %v384_v31 = vld [vmem:[#allocation10] sm:$0xff] }
  0x43   :  { %541 = vmatprep.subr.mxu0 %v103_v4  ;;  %549 = vmatpush3.msra.mxu1 %v200_v7  ;;  %v503_v33 = vld [vmem:[%s837_s6] ss:$0 sm:$0xff]  ;;  %s687_s6 = scalar_lea.vmem %s486_s19, 256 }
  0x44   :  { %542 = vmatpush3.msra.mxu0 %v103_v4  ;;  %550 = vmatprep.subr.mxu1 %v199_v8  ;;  %v508_v37 = vld [vmem:[%s839_s8] ss:$0 sm:$0xff]  ;;  %p688_p11 = scmp.ne.s32.totalorder %s486_s19, %s687_s6  ;;  %p693_p13 = scmp.lt.s32.totalorder %s687_s6, %s687_s6 }
  0x45   :  { %544 = vmatmul.mubr.msk.f32.vlgmr.msra.gmra.mxu0 %vm114_vm0, %v102_v5  ;;  %551 = vmatpush3.msra.mxu1 %v199_v8 }
  0x46   :  { %552 = vmatprep.subr.mxu1 %v198_v9  ;;  %557 = vmatprep.subr.mxu0 %v205_v17  ;;  %p694_p0 = por %p693_p13, %p692_p12 }
  0x47   :  { %553 = vmatpush3.msra.mxu1 %v198_v9  ;;  %558 = vmatpush3.msra.mxu0 %v205_v17 }
  0x48   :  { %559 = vmatprep.subr.mxu0 %v204_v18  ;;  %568 = vmatprep.subr.mxu1 %v387_v21  ;;  %p695_p1 = pnand %p694_p0, %p688_p11 }
  0x49   :  { %560 = vmatpush3.msra.mxu0 %v204_v18 }
  0x4a   :  { %561 = vmatprep.subr.mxu0 %v203_v19 }
  0x4b   :  { %562 = vmatpush3.msra.mxu0 %v203_v19 }
  0x4c   :  { %563 = vmatprep.subr.mxu0 %v202_v20 }
  0x4d   :  { %564 = vmatpush3.msra.mxu0 %v202_v20 }
 0x105   :  { %v545_v11 = vpop.f32.mrf.mxu0 }
 0x106   :  { %v193_v12 = vadd.f32 %v545_v11, %v499_v10 }
 0x107   :  { %v187_v13 = vpop.f32.mrf.mxu0 }
 0x108   :  { %v188_v14 = vadd.f32 %v499_v10, %v187_v13  ;;  %v197_v16 = vmax.f32 %v193_v12, 0.0 }
 0x10a   :  { %v196_v15 = vmax.f32 %v188_v14, 0.0 }
 0x10c   :  { %554 = vmatprep.mubr.msk.f32.mxu1 %vm114_vm0, %v196_v15 }
 0x10d   :  { %555 = vmatmul.mubr.msk.f32.vlgmr.msra.gmra.mxu1 %vm114_vm0, %v197_v16 }
 0x10e   :  { %569 = vmatpush3.msra.mxu1 %v387_v21 }
 0x10f   :  { %570 = vmatprep.subr.mxu1 %v386_v29 }
 0x110   :  { %571 = vmatpush3.msra.mxu1 %v386_v29 }
 0x111   :  { %572 = vmatprep.subr.mxu1 %v385_v30 }
 0x112   :  { %573 = vmatpush3.msra.mxu1 %v385_v30 }
 0x113   :  { %574 = vmatprep.subr.mxu1 %v384_v31 }
 0x114   :  { %575 = vmatpush3.msra.mxu1 %v384_v31 }
 0x1cd   :  { %v556_v23 = vpop.f32.mrf.mxu1 }
 0x1ce   :  { %v298_v24 = vadd.f32 %v556_v23, %v502_v22 }
 0x1cf   :  { %v292_v25 = vpop.f32.mrf.mxu1 }
 0x1d0   :  { %v293_v26 = vadd.f32 %v502_v22, %v292_v25  ;;  %v302_v28 = vmax.f32 %v298_v24, 0.0 }
 0x1d2   :  { %v301_v27 = vmax.f32 %v293_v26, 0.0 }
 0x1d4   :  { %565 = vmatprep.mubr.msk.f32.mxu0 %vm114_vm0, %v301_v27 }
 0x1d5   :  { %566 = vmatmul.mubr.msk.f32.vlgmr.msra.gmra.mxu0 %vm114_vm0, %v302_v28 }
 0x295   :  { %v567_v32 = vpop.f32.mrf.mxu0 }
 0x296   :  { %v381_v36 = vadd.f32 %v567_v32, %v503_v33 }
 0x297   :  { %v375_v34 = vpop.f32.mrf.mxu0 }
 0x298   :  { %v376_v35 = vadd.f32 %v503_v33, %v375_v34 }
 0x29a   :  { %576 = vmatprep.mubr.msk.f32.mxu1 %vm114_vm0, %v376_v35 }
 0x29b   :  { %577 = vmatmul.mubr.msk.f32.vlgmr.msra.gmra.mxu1 %vm114_vm0, %v381_v36 }
 0x35b   :  { %v578_v38 = vpop.f32.mrf.mxu1 }
 0x35c   :  { %v473_v39 = vadd.f32 %v578_v38, %v508_v37 }
 0x35d   :  { %v467_v40 = vpop.f32.mrf.mxu1 }
 0x35e   :  { %v477_v41 = vmax.f32 %v473_v39, 0.0  ;;  %v468_v42 = vadd.f32 %v508_v37, %v467_v40 }
 0x360   :  { %479 = vst.msk [vmem:[#allocation11 + $0x8] sm:$0xff] %vm114_vm0, %v477_v41  ;;  %v476_v43 = vmax.f32 %v468_v42, 0.0 }
 0x362   :  { %478 = vst.msk [vmem:[#allocation11] sm:$0xff] %vm114_vm0, %v476_v43 }
 0x363   :  { %698 = shalt.err (!%p695_p1)
}
 0x364   :  { %491 = dma.vmem_to_hbm [thread:$0]  %s486_s19, 256, %s840_s9, [#allocation4], %s717_s14, %s717_s14, %s718_s15  }
 0x365   :  { %713 = dma.done.wait [#allocation4], 256  }
 0x366   :  { %714 = vsyncadd [#allocation4], 4294967040 }
 0x367   :  { %495 = vsyncpa [#allocation3], 1 }
 0x368   :  { %496 = vsyncpa [#allocation6], 1 }
 0x369   :  { %497 = vsyncpa [#allocation9], 1 }
 0x36a   :  { %498 = vsyncpa [#allocation4], 1 }

</bundles_post_ra>
